<compile_context>
chip_gen: v6e
topology: v6e:2x2x1
jax: 0.10.0
libtpu: 0.0.40
codegen_flags: <defaults>
</compile_context>

<pallas_src>
import math

import numpy as np
import jax
import jax.numpy as jnp
from jax.experimental import pallas as pl
from jax.experimental.pallas import tpu as pltpu


_SQRT_2_OVER_PI = math.sqrt(2.0 / math.pi)


def _round_up(x: int, mult: int) -> int:
    return (x + mult - 1) // mult * mult


def mlp_kernel(x_ref, w1_ref, b1_ref, w2_ref, b2_ref, o_ref):
    # x tile: (tm, c_in_p).  Weights/biases are whole arrays, resident in VMEM across grid
    # steps (constant index_map => no per-step re-DMA).
    x = x_ref[...]

    # fc1: bf16 operands, f32 accumulation on the MXU.
    h = jnp.dot(x.astype(jnp.bfloat16), w1_ref[...],
                preferred_element_type=jnp.float32)
    h = h + b1_ref[...]                                     # f32 bias add

    # tanh-approximate GELU in bf16: the cube/mul/add work rides the half-width bf16 VALU
    # path (v6e/v7x) and the tanh goes to the EUP slot (free vs. the VALU).
    hb = h.astype(jnp.bfloat16)
    inner = _SQRT_2_OVER_PI * (hb + 0.044715 * (hb * hb * hb))
    g = (0.5 * hb) * (1.0 + jnp.tanh(inner))                # bf16, ready for the MXU

    # fc2: bf16 operands, f32 accumulation.
    out = jnp.dot(g, w2_ref[...], preferred_element_type=jnp.float32)
    out = out + b2_ref[...]

    # Dropout(p=0.0) is the identity at inference.
    o_ref[...] = out.astype(o_ref.dtype)


def mlp_forward(x, w1, b1, w2, b2, *, block_m=512):
    """out = fc2(gelu_tanh(fc1(x))); x: (..., c_in) -> (..., c_out).

    Leading dims are flattened into the GEMM M dimension; c_in / hidden / c_out are
    zero-padded to multiples of 128 (exact), M is padded up to a whole number of row tiles.
    """
    orig_shape = x.shape
    c_in = orig_shape[-1]
    m = int(np.prod(orig_shape[:-1]))
    hidden = w1.shape[1]
    c_out = w2.shape[1]

    # Lane / MXU alignment: last dims multiples of 128.
    c_in_p = _round_up(c_in, 128)
    hid_p = _round_up(hidden, 128)
    c_out_p = _round_up(c_out, 128)

    # Row tile: multiple of 8 sublanes; M padded up to grid_m * tm (no divisibility assert).
    tm = min(block_m, _round_up(m, 8))
    grid_m = pl.cdiv(m, tm)
    m_p = grid_m * tm

    x2 = x.reshape(m, c_in)
    if (m_p, c_in_p) != (m, c_in):
        x2 = jnp.pad(x2, ((0, m_p - m), (0, c_in_p - c_in)))

    # Zero-padded bf16 weights (halves weight DMA / VMEM, fast MXU path); f32 biases.
    w1p = jnp.pad(w1, ((0, c_in_p - c_in), (0, hid_p - hidden))).astype(jnp.bfloat16)
    w2p = jnp.pad(w2, ((0, hid_p - hidden), (0, c_out_p - c_out))).astype(jnp.bfloat16)
    b1p = jnp.pad(b1.reshape(1, hidden), ((0, 0), (0, hid_p - hidden))).astype(jnp.float32)
    b2p = jnp.pad(b2.reshape(1, c_out), ((0, 0), (0, c_out_p - c_out))).astype(jnp.float32)

    # Explicit VMEM budget (valid on v7x's 64 MiB/TC): double-buffered weights & biases,
    # double-buffered x/out tiles, plus f32 (tm x hidden) intermediate working set.
    vmem_needed = (
        2 * (w1p.size * 2 + w2p.size * 2 + b1p.size * 4 + b2p.size * 4)
        + 2 * tm * c_in_p * x2.dtype.itemsize
        + 2 * tm * c_out_p * x.dtype.itemsize
        + 3 * tm * hid_p * 4
    )
    vmem_limit = int(min(max(vmem_needed * 5 // 4, 32 * 1024 * 1024), 64 * 1024 * 1024))

    # TODO(synk): for very large hidden widths (2*C*H bf16 weights >> ~24 MiB on v7x),
    # tile the hidden/K dimension with an f32 VMEM accumulator (apply GELU per hidden
    # chunk) and mark the weight BlockSpecs pipeline_mode=pl.Buffered(1); whole-weight
    # residency is optimal at the sizes used here.  fp8 weights are a further v7x option.
    out = pl.pallas_call(
        mlp_kernel,
        out_shape=jax.ShapeDtypeStruct((m_p, c_out_p), x.dtype),
        grid=(grid_m,),
        in_specs=[
            pl.BlockSpec((tm, c_in_p), lambda i: (i, 0)),      # activations: one row tile / step
            pl.BlockSpec((c_in_p, hid_p), lambda i: (0, 0)),   # w1: resident across grid
            pl.BlockSpec((1, hid_p), lambda i: (0, 0)),        # b1
            pl.BlockSpec((hid_p, c_out_p), lambda i: (0, 0)),  # w2: resident across grid
            pl.BlockSpec((1, c_out_p), lambda i: (0, 0)),      # b2
        ],
        out_specs=pl.BlockSpec((tm, c_out_p), lambda i: (i, 0)),  # lane-dense (>=128) stores
        compiler_params=pltpu.CompilerParams(
            dimension_semantics=("parallel",),                 # megacore: split row tiles
            vmem_limit_bytes=vmem_limit,
        ),
    )(x2, w1p, b1p, w2p, b2p)

    out = out[:m, :c_out]
    return out.reshape(orig_shape[:-1] + (c_out,))


# ---------------- pure-JAX f32 reference (matches the PyTorch module) ----------------
def reference_forward(x, w1, b1, w2, b2):
    h = x.astype(jnp.float32) @ w1 + b1
    g = 0.5 * h * (1.0 + jax.scipy.special.erf(h / math.sqrt(2.0)))   # exact GELU
    return g @ w2 + b2


if __name__ == "__main__":
    B, N, C = 2, 8, 32          # batch, tokens, in_features (= out_features)
    HIDDEN = 128                # hidden_features (mlp_ratio = 4)

    key = jax.random.PRNGKey(0)
    kx, k1, k2, k3, k4 = jax.random.split(key, 5)
    x = jax.random.normal(kx, (B, N, C), jnp.float32)

    # Linear weights pre-transposed to (in_features, out_features): kernel does x @ W + b.
    w1 = 0.05 * jax.random.normal(k1, (C, HIDDEN), jnp.float32)
    b1 = 0.02 * jax.random.normal(k2, (HIDDEN,), jnp.float32)
    w2 = 0.05 * jax.random.normal(k3, (HIDDEN, C), jnp.float32)
    b2 = 0.02 * jax.random.normal(k4, (C,), jnp.float32)

    out = mlp_forward(x, w1, b1, w2, b2)
    out = jax.block_until_ready(out)

    ref = reference_forward(x, w1, b1, w2, b2)
    assert out.shape == (B, N, C)
    # bf16 matmul operands + bf16 tanh-approximate GELU vs. the f32 exact-erf reference:
    # observed error ~1e-3, so the 2e-2 tolerance has ample margin.
    np.testing.assert_allclose(np.asarray(out), np.asarray(ref), rtol=2e-2, atol=2e-2)

    print("KERNEL_OK")
</pallas_src>

<mosaic_0001>
module attributes {stable_mosaic.version = 11 : i64} {
  func.func @mlp_kernel(%arg0: i32, %arg1: memref<16x128xf32, #tpu.memory_space<vmem>>, %arg2: memref<128x128xbf16, #tpu.memory_space<vmem>>, %arg3: memref<1x128xf32, #tpu.memory_space<vmem>>, %arg4: memref<128x128xbf16, #tpu.memory_space<vmem>>, %arg5: memref<1x128xf32, #tpu.memory_space<vmem>>, %arg6: memref<16x128xf32, #tpu.memory_space<vmem>>) attributes {dimension_semantics = [#tpu.dimension_semantics<parallel>], iteration_bounds = array<i64: 1>, scalar_prefetch = 0 : i64, scratch_operands = 0 : i64, tpu.core_type = #tpu.core_type<tc>, window_params = [{transform_indices = @transform_0, window_bounds = array<i64: 16, 128>}, {pipeline_mode = #tpu.pipeline_mode<synchronous>, transform_indices = @transform_1, window_bounds = array<i64: 128, 128>}, {pipeline_mode = #tpu.pipeline_mode<synchronous>, transform_indices = @transform_2, window_bounds = array<i64: 1, 128>}, {pipeline_mode = #tpu.pipeline_mode<synchronous>, transform_indices = @transform_3, window_bounds = array<i64: 128, 128>}, {pipeline_mode = #tpu.pipeline_mode<synchronous>, transform_indices = @transform_4, window_bounds = array<i64: 1, 128>}, {transform_indices = @transform_5, window_bounds = array<i64: 16, 128>}]} {
    %c0 = arith.constant 0 : index
    %c0_0 = arith.constant 0 : index
    %0 = vector.load %arg1[%c0, %c0_0] : memref<16x128xf32, #tpu.memory_space<vmem>>, vector<16x128xf32>
    %1 = arith.truncf %0 : vector<16x128xf32> to vector<16x128xbf16>
    %c0_1 = arith.constant 0 : index
    %c0_2 = arith.constant 0 : index
    %2 = vector.load %arg2[%c0_1, %c0_2] : memref<128x128xbf16, #tpu.memory_space<vmem>>, vector<128x128xbf16>
    %cst = arith.constant dense<0.000000e+00> : vector<16x128xf32>
    %3 = tpu.matmul %1, %2, %cst {dimension_numbers = #tpu.dot_dimension_numbers<[1], [0], [0], [1], [0, 0, 1, 1], [], []>} : vector<16x128xbf16>, vector<128x128xbf16>, vector<16x128xf32> -> vector<16x128xf32>
    %c0_3 = arith.constant 0 : index
    %c0_4 = arith.constant 0 : index
    %4 = vector.load %arg3[%c0_3, %c0_4] : memref<1x128xf32, #tpu.memory_space<vmem>>, vector<1x128xf32>
    %5 = vector.broadcast %4 : vector<1x128xf32> to vector<16x128xf32>
    %6 = arith.addf %3, %5 : vector<16x128xf32>
    %7 = arith.truncf %6 : vector<16x128xf32> to vector<16x128xbf16>
    %8 = arith.mulf %7, %7 : vector<16x128xbf16>
    %9 = arith.mulf %8, %7 : vector<16x128xbf16>
    %cst_5 = arith.constant 4.467770e-02 : bf16
    %10 = vector.broadcast %cst_5 : bf16 to vector<16x128xbf16>
    %11 = arith.mulf %10, %9 : vector<16x128xbf16>
    %12 = arith.addf %7, %11 : vector<16x128xbf16>
    %cst_6 = arith.constant 7.968750e-01 : bf16
    %13 = vector.broadcast %cst_6 : bf16 to vector<16x128xbf16>
    %14 = arith.mulf %13, %12 : vector<16x128xbf16>
    %cst_7 = arith.constant 5.000000e-01 : bf16
    %15 = vector.broadcast %cst_7 : bf16 to vector<16x128xbf16>
    %16 = arith.mulf %15, %7 : vector<16x128xbf16>
    %17 = math.tanh %14 : vector<16x128xbf16>
    %cst_8 = arith.constant 1.000000e+00 : bf16
    %18 = vector.broadcast %cst_8 : bf16 to vector<16x128xbf16>
    %19 = arith.addf %18, %17 : vector<16x128xbf16>
    %20 = arith.mulf %16, %19 : vector<16x128xbf16>
    %c0_9 = arith.constant 0 : index
    %c0_10 = arith.constant 0 : index
    %21 = vector.load %arg4[%c0_9, %c0_10] : memref<128x128xbf16, #tpu.memory_space<vmem>>, vector<128x128xbf16>
    %cst_11 = arith.constant dense<0.000000e+00> : vector<16x128xf32>
    %22 = tpu.matmul %20, %21, %cst_11 {dimension_numbers = #tpu.dot_dimension_numbers<[1], [0], [0], [1], [0, 0, 1, 1], [], []>} : vector<16x128xbf16>, vector<128x128xbf16>, vector<16x128xf32> -> vector<16x128xf32>
    %c0_12 = arith.constant 0 : index
    %c0_13 = arith.constant 0 : index
    %23 = vector.load %arg5[%c0_12, %c0_13] : memref<1x128xf32, #tpu.memory_space<vmem>>, vector<1x128xf32>
    %24 = vector.broadcast %23 : vector<1x128xf32> to vector<16x128xf32>
    %25 = arith.addf %22, %24 : vector<16x128xf32>
    %c0_14 = arith.constant 0 : index
    %c0_15 = arith.constant 0 : index
    %26 = vector.load %arg6[%c0_14, %c0_15] : memref<16x128xf32, #tpu.memory_space<vmem>>, vector<16x128xf32>
    tpu.vector_store %arg6[%c0_14, %c0_15], %25 {strides = array<i32>} : memref<16x128xf32, #tpu.memory_space<vmem>>, vector<16x128xf32>,
    return
  }
  func.func @transform_0(%arg0: i32) -> (i32, i32) {
    %c0_i32 = arith.constant 0 : i32
    %c0_i32_0 = arith.constant 0 : i32
    return %arg0, %c0_i32 : i32, i32
  }
  func.func @transform_1(%arg0: i32) -> (i32, i32) {
    %c0_i32 = arith.constant 0 : i32
    %c0_i32_0 = arith.constant 0 : i32
    %c0_i32_1 = arith.constant 0 : i32
    return %c0_i32, %c0_i32_0 : i32, i32
  }
  func.func @transform_2(%arg0: i32) -> (i32, i32) {
    %c0_i32 = arith.constant 0 : i32
    %c0_i32_0 = arith.constant 0 : i32
    %c0_i32_1 = arith.constant 0 : i32
    return %c0_i32, %c0_i32_0 : i32, i32
  }
  func.func @transform_3(%arg0: i32) -> (i32, i32) {
    %c0_i32 = arith.constant 0 : i32
    %c0_i32_0 = arith.constant 0 : i32
    %c0_i32_1 = arith.constant 0 : i32
    return %c0_i32, %c0_i32_0 : i32, i32
  }
  func.func @transform_4(%arg0: i32) -> (i32, i32) {
    %c0_i32 = arith.constant 0 : i32
    %c0_i32_0 = arith.constant 0 : i32
    %c0_i32_1 = arith.constant 0 : i32
    return %c0_i32, %c0_i32_0 : i32, i32
  }
  func.func @transform_5(%arg0: i32) -> (i32, i32) {
    %c0_i32 = arith.constant 0 : i32
    %c0_i32_0 = arith.constant 0 : i32
    return %arg0, %c0_i32 : i32, i32
  }
}

</mosaic_0001>

<bundles_post_ra>
// kernel: tpu_custom_call.1
= control target key start
LH: loop header
LB: loop body
LE: loop exit
PB: predicated region body
PF: predicated region fallthrough
CT: control target
= control target key end

     0   :  { %10 = vsyncpa [#allocation3], 0  ;;  %s578_s0 = inlined_call_operand.hbm [shape: f32[16,128], index: 0, kind: input, shape index: {}]   ;;  %s579_s1 = inlined_call_operand.hbm [shape: bf16[128,128], index: 1, kind: input, shape index: {}]   ;;  %s580_s2 = inlined_call_operand.vmem [shape: f32[1,128], index: 2, kind: input, shape index: {}]   ;;  %s581_s3 = inlined_call_operand.hbm [shape: bf16[128,128], index: 3, kind: input, shape index: {}]   ;;  %s582_s4 = inlined_call_operand.vmem [shape: f32[1,128], index: 4, kind: input, shape index: {}]   ;;  %s583_s5 = inlined_call_operand.hbm [shape: f32[16,128], index: 5, kind: output, shape index: {}]  }
   0x1   :  { %11 = vsyncpa [#allocation6], 0 }
   0x2   :  { %12 = vsyncpa [#allocation4], 0  ;;  %s514_s18 = smov [#allocation5]  }
   0x3   :  { %s30_s19 = sshll.u32 %s514_s18, 4  ;;  %s31_s19 = int_to_ptr.vmem [resolvable:$true] %s30_s19 }
   0x4   :  { %s436_s20 = scalar_lea.vmem %s31_s19, 1024  ;;  %p441_p1 = scmp.lt.s32.totalorder %s31_s19, %s31_s19 }
   0x5   :  { %p437_p0 = scmp.ne.s32.totalorder %s31_s19, %s436_s20  ;;  %p442_p2 = scmp.lt.s32.totalorder %s436_s20, %s436_s20 }
   0x7   :  { %p443_p3 = por %p442_p2, %p441_p1 }
   0x9   :  { %p444_p4 = pnand %p443_p3, %p437_p0 }
   0xb   :  { %447 = shalt.err (!%p444_p4)
}
   0xc   :  { %s515_s21 = smov 64   ;;  %s516_s22 = smov 4  }
   0xd   :  { %36 = dma.hbm_to_vmem [thread:$0]  %s579_s1, 1024, %s31_s19, [#allocation6], %s515_s21, %s515_s21, %s516_s22  }
   0xe   :  { %s517_s25 = smov [#allocation2]  }
   0xf   :  { %s18_s26 = sshll.u32 %s517_s25, 4  ;;  %s19_s26 = int_to_ptr.vmem [resolvable:$true] %s18_s26 }
  0x10   :  { %s456_s27 = scalar_lea.vmem %s19_s26, 256  ;;  %p461_p6 = scmp.lt.s32.totalorder %s19_s26, %s19_s26 }
  0x11   :  { %p457_p5 = scmp.ne.s32.totalorder %s19_s26, %s456_s27  ;;  %p462_p7 = scmp.lt.s32.totalorder %s456_s27, %s456_s27 }
  0x13   :  { %p463_p8 = por %p462_p7, %p461_p6 }
  0x15   :  { %p464_p9 = pnand %p463_p8, %p457_p5 }
  0x17   :  { %467 = shalt.err (!%p464_p9)
}
  0x18   :  { %s518_s28 = smov 128   ;;  %s519_s29 = smov 8  }
  0x19   :  { %24 = dma.hbm_to_vmem [thread:$0]  %s578_s0, 256, %s19_s26, [#allocation3], %s518_s28, %s518_s28, %s519_s29  }
  0x1a   :  { %s520_s1 = smov [#allocation7]  }
  0x1b   :  { %s44_s7 = sshll.u32 %s520_s1, 4  ;;  %s45_s7 = int_to_ptr.vmem [resolvable:$true] %s44_s7 }
  0x1c   :  { %s476_s8 = scalar_lea.vmem %s45_s7, 1024  ;;  %p481_p11 = scmp.lt.s32.totalorder %s45_s7, %s45_s7 }
  0x1d   :  { %p477_p10 = scmp.ne.s32.totalorder %s45_s7, %s476_s8  ;;  %p482_p12 = scmp.lt.s32.totalorder %s476_s8, %s476_s8 }
  0x1f   :  { %p483_p13 = por %p482_p12, %p481_p11 }
  0x21   :  { %p484_p0 = pnand %p483_p13, %p477_p10 }
  0x23   :  { %487 = shalt.err (!%p484_p0)
}
  0x24   :  { %50 = dma.hbm_to_vmem [thread:$0]  %s581_s3, 1024, %s45_s7, [#allocation6], %s515_s21, %s515_s21, %s516_s22  }
  0x25   :  { %508 = dma.done.wait [#allocation3], 256  }
  0x26   :  { %509 = vsyncadd [#allocation3], 4294967040 }
  0x27   :  { %510 = dma.done.wait [#allocation6], 2048  }
  0x28   :  { %511 = vsyncadd [#allocation6], 4294965248  ;;  %v521_v0 = vmov 0.0   ;;  %vm522_vm0 = vmmov 0   ;;  %v410_v1 = vld [vmem:[#allocation5 + $0x38] sm:$0xff]   ;;  %v411_v2 = vld [vmem:[#allocation5 + $0x30] sm:$0xff]  }
  0x29   :  { %360 = vmatprep.subr.bf16.mxu0 %v521_v0  ;;  %376 = vmatprep.mubr.msk.bf16.mxu0 %vm522_vm0, %v521_v0  ;;  %v412_v3 = vld [vmem:[#allocation5 + $0x28] sm:$0xff]   ;;  %v413_v4 = vld [vmem:[#allocation5 + $0x20] sm:$0xff]   ;;  %v414_v5 = vld [vmem:[#allocation5 + $0x18] sm:$0xff]  }
  0x2a   :  { %380 = vmatprep.subr.bf16.mxu1 %v521_v0  ;;  %396 = vmatprep.mubr.msk.bf16.mxu1 %vm522_vm0, %v521_v0  ;;  %v415_v6 = vld [vmem:[#allocation5 + $0x10] sm:$0xff]   ;;  %v416_v7 = vld [vmem:[#allocation5 + $0x8] sm:$0xff]   ;;  %v417_v8 = vld [vmem:[#allocation5] sm:$0xff]  }
  0x2b   :  { %361 = vmatpush3.bf16.msra.mxu0 %v410_v1  ;;  %v67_v9 = vld [vmem:[#allocation2] sm:$0xff]  ;;  %v68_v10 = vld [vmem:[#allocation2 + $0x8] sm:$0xff]  ;;  %v420_v14 = vld [vmem:[#allocation7 + $0x28] sm:$0xff]  }
  0x2c   :  { %362 = vmatprep.subr.bf16.mxu0 %v521_v0  ;;  %v69_v11 = vpack.c.bf16 %v68_v10, %v67_v9  ;;  %v418_v12 = vld [vmem:[#allocation7 + $0x38] sm:$0xff]   ;;  %v419_v13 = vld [vmem:[#allocation7 + $0x30] sm:$0xff]   ;;  %v421_v15 = vld [vmem:[#allocation7 + $0x20] sm:$0xff]  }
  0x2d   :  { %381 = vmatpush3.bf16.msra.mxu1 %v418_v12  ;;  %v422_v16 = vld [vmem:[#allocation7 + $0x18] sm:$0xff]   ;;  %v423_v17 = vld [vmem:[#allocation7 + $0x10] sm:$0xff]   ;;  %v424_v18 = vld [vmem:[#allocation7 + $0x8] sm:$0xff]  }
  0x2e   :  { %382 = vmatprep.subr.bf16.mxu1 %v521_v0  ;;  %v425_v19 = vld [vmem:[#allocation7] sm:$0xff]   ;;  %v324_v21 = vld [vmem:[%s580_s2] ss:$0 sm:$0xff]  ;;  %s523_s2 = smov [#allocation8]  }
  0x2f   :  { %363 = vmatpush3.bf16.msra.mxu0 %v411_v2  ;;  %v333_v37 = vld [vmem:[%s582_s4] ss:$0 sm:$0xff]  ;;  %s311_s13 = sshll.u32 %s523_s2, 4  ;;  %s312_s13 = int_to_ptr.vmem [resolvable:$true] %s311_s13 }
  0x30   :  { %364 = vmatprep.subr.bf16.mxu0 %v521_v0  ;;  %s488_s14 = scalar_lea.vmem %s312_s13, 256  ;;  %p493_p2 = scmp.lt.s32.totalorder %s312_s13, %s312_s13 }
  0x31   :  { %383 = vmatpush3.bf16.msra.mxu1 %v419_v13  ;;  %p489_p1 = scmp.ne.s32.totalorder %s312_s13, %s488_s14  ;;  %p494_p3 = scmp.lt.s32.totalorder %s488_s14, %s488_s14 }
  0x32   :  { %384 = vmatprep.subr.bf16.mxu1 %v521_v0 }
  0x33   :  { %365 = vmatpush3.bf16.msra.mxu0 %v412_v3  ;;  %p495_p4 = por %p494_p3, %p493_p2 }
  0x34   :  { %366 = vmatprep.subr.bf16.mxu0 %v521_v0 }
  0x35   :  { %385 = vmatpush3.bf16.msra.mxu1 %v420_v14  ;;  %p496_p5 = pnand %p495_p4, %p489_p1 }
  0x36   :  { %386 = vmatprep.subr.bf16.mxu1 %v521_v0 }
  0x37   :  { %367 = vmatpush3.bf16.msra.mxu0 %v413_v4 }
  0x38   :  { %368 = vmatprep.subr.bf16.mxu0 %v521_v0 }
  0x39   :  { %387 = vmatpush3.bf16.msra.mxu1 %v421_v15 }
  0x3a   :  { %388 = vmatprep.subr.bf16.mxu1 %v521_v0 }
  0x3b   :  { %369 = vmatpush3.bf16.msra.mxu0 %v414_v5 }
  0x3c   :  { %370 = vmatprep.subr.bf16.mxu0 %v521_v0 }
  0x3d   :  { %389 = vmatpush3.bf16.msra.mxu1 %v422_v16 }
  0x3e   :  { %390 = vmatprep.subr.bf16.mxu1 %v521_v0 }
  0x3f   :  { %371 = vmatpush3.bf16.msra.mxu0 %v415_v6 }
  0x40   :  { %372 = vmatprep.subr.bf16.mxu0 %v521_v0 }
  0x41   :  { %391 = vmatpush3.bf16.msra.mxu1 %v423_v17 }
  0x42   :  { %392 = vmatprep.subr.bf16.mxu1 %v521_v0 }
  0x43   :  { %373 = vmatpush3.bf16.msra.mxu0 %v416_v7 }
  0x44   :  { %374 = vmatprep.subr.bf16.mxu0 %v521_v0 }
  0x45   :  { %393 = vmatpush3.bf16.msra.mxu1 %v424_v18 }
  0x46   :  { %394 = vmatprep.subr.bf16.mxu1 %v521_v0 }
  0x47   :  { %375 = vmatpush3.bf16.msra.mxu0 %v417_v8 }
  0x49   :  { %395 = vmatpush3.bf16.msra.mxu1 %v425_v19 }
  0x4a   :  { %377 = vmatmul.mubr.bf16.vlgmr.msra.gmra.mxu0 %v69_v11 }
 0x10a   :  { %v175_v20 = vpop.f32.mrf.mxu0 }
 0x10b   :  { %v176_v24 = vadd.f32 %v324_v21, %v175_v20 }
 0x10c   :  { %v378_v22 = vpop.f32.mrf.mxu0 }
 0x10e   :  { %v178_v23 = vpop.f32.mrf.mxu0 }
 0x10f   :  { %v179_v25 = vadd.f32 %v324_v21, %v178_v23 }
 0x110   :  { %v379_v26 = vpop.f32.mrf.mxu0 }
 0x111   :  { %v182_v27 = vpack.c.bf16 %v179_v25, %v176_v24 }
 0x113   :  { %v183_v28 = vmul.bf16 %v182_v27, %v182_v27  ;;  %v188_v34 = vmul.bf16 1056980736, %v182_v27 }
 0x115   :  { %v184_v29 = vmul.bf16 %v183_v28, %v182_v27 }
 0x117   :  { %v185_v30 = vmul.bf16 1027030327, %v184_v29 }
 0x119   :  { %v186_v31 = vadd.bf16 %v185_v30, %v182_v27 }
 0x11b   :  { %v187_v32 = vmul.bf16 1061961548, %v186_v31 }
 0x11d   :  { %426 = vtanh.bf16 %v187_v32 }
 0x12b   :  { %v427_v33 = vpop.eup %426 }
 0x12c   :  { %v190_v35 = vadd.bf16 1065369472, %v427_v33 }
 0x12e   :  { %v191_v36 = vmul.bf16 %v190_v35, %v188_v34 }
 0x130   :  { %397 = vmatmul.mubr.bf16.vlgmr.msra.gmra.mxu1 %v191_v36 }
 0x1f0   :  { %v297_v38 = vpop.f32.mrf.mxu1 }
 0x1f1   :  { %v298_v39 = vadd.f32 %v333_v37, %v297_v38 }
 0x1f2   :  { %v398_v40 = vpop.f32.mrf.mxu1 }
 0x1f3   :  { %304 = vst [vmem:[#allocation8] sm:$0xff] %v298_v39 }
 0x1f4   :  { %v300_v41 = vpop.f32.mrf.mxu1 }
 0x1f5   :  { %v301_v42 = vadd.f32 %v333_v37, %v300_v41 }
 0x1f6   :  { %v399_v43 = vpop.f32.mrf.mxu1 }
 0x1f7   :  { %305 = vst [vmem:[#allocation8 + $0x8] sm:$0xff] %v301_v42 }
 0x1f8   :  { %499 = shalt.err (!%p496_p5)
}
 0x1f9   :  { %317 = dma.vmem_to_hbm [thread:$0]  %s312_s13, 256, %s583_s5, [#allocation4], %s518_s28, %s518_s28, %s519_s29  }
 0x1fa   :  { %512 = dma.done.wait [#allocation4], 256  }
 0x1fb   :  { %513 = vsyncadd [#allocation4], 4294967040 }
 0x1fc   :  { %321 = vsyncpa [#allocation3], 1 }
 0x1fd   :  { %322 = vsyncpa [#allocation6], 1 }
 0x1fe   :  { %323 = vsyncpa [#allocation4], 1 }

</bundles_post_ra>
